<compile_context>
chip_gen: v7x
topology: tpu7x:2x2x1
jax: 0.10.0
libtpu: 0.0.40
codegen_flags: <defaults>
</compile_context>

<pallas_src>
import functools

import jax
import jax.numpy as jnp
from jax.experimental import pallas as pl
from jax.experimental.pallas import tpu as pltpu


def _ce2d_kernel(pred_ref, tgt_ref, sum_ref, cnt_ref, *scratch,
                 ignore_label, num_pixels, accumulate):
    """One (batch, pixel-tile) step of masked NLL(log_softmax(pred), tgt)."""
    i = pl.program_id(1)
    c, tp = pred_ref.shape[1], pred_ref.shape[2]

    if accumulate:
        # Output blocks are resident across the pixel-tile axis: zero on the
        # first visit of each batch, and (re)materialize the class iota into
        # VMEM scratch so subsequent steps re-read it with vld instead of
        # regenerating it on the VALU.
        cls_ref = scratch[0]

        @pl.when(i == 0)
        def _():
            sum_ref[...] = jnp.zeros_like(sum_ref)
            cnt_ref[...] = jnp.zeros_like(cnt_ref)
            cls_ref[...] = jax.lax.broadcasted_iota(jnp.int32, (c, tp), 0)

        classes = cls_ref[...]                                         # (C, TP)
    else:
        # Partials mode: every grid point owns its own output block (both grid
        # axes "parallel"), so there is no safe "first step" hook per core;
        # generate the iota inline.
        classes = jax.lax.broadcasted_iota(jnp.int32, (c, tp), 0)      # (C, TP)

    x = pred_ref[0].astype(jnp.float32)   # (C, TP): classes on sublanes, pixels on lanes
    t = tgt_ref[0]                        # (1, TP) int32

    # Mask the ragged tail of the pixel axis (no wrapper-side padding of logits).
    # NOTE: negative targets (other than ignore_label) are also masked out here,
    # whereas PyTorch's F.cross_entropy would error.
    pix = i * tp + jax.lax.broadcasted_iota(jnp.int32, (1, tp), 1)
    valid = (pix < num_pixels) & (t >= 0) & (t != ignore_label)        # (1, TP)

    # Numerically-stable log-softmax over the class (sublane) axis; the shifted
    # logits (x - m) are reused for both the exp() and the one-hot gather.
    m = jnp.max(x, axis=0, keepdims=True)                              # (1, TP)
    xm = x - m                                                         # (C, TP)
    s = jnp.sum(jnp.exp(xm), axis=0, keepdims=True)                    # (1, TP)

    # Target-class (shifted) logit via one-hot compare (no dynamic gather on TPU).
    t_safe = jnp.where(valid, t, 0)                                    # (1, TP)
    onehot = classes == t_safe                                         # (C, TP)
    tgt_shift = jnp.sum(jnp.where(onehot, xm, 0.0), axis=0, keepdims=True)  # (1, TP)

    # loss = (log(s) + m) - x[t] = log(s) - (x[t] - m) = log(s) - tgt_shift
    per_pixel = jnp.where(valid, jnp.log(s) - tgt_shift, 0.0)          # (1, TP)
    vcnt = valid.astype(jnp.float32)                                   # (1, TP)

    if accumulate:
        # Lane-wide VPU accumulation; counts stay exact in f32 (< 2^24 per lane).
        sum_ref[...] += per_pixel[None]
        cnt_ref[...] += vcnt[None]
    else:
        sum_ref[...] = per_pixel[None]
        cnt_ref[...] = vcnt[None]


def cross_entropy_2d(predict, target, weight=None, *, size_average=True,
                     ignore_label=255, tile_pixels=None,
                     vmem_budget=32 * 1024 * 1024):
    """predict: (n, c, h, w) float, target: (n, h, w) int. Returns scalar loss."""
    # TODO(synk): per-class `weight` rescaling (only the weight=None path is implemented).
    assert weight is None
    assert predict.ndim == 4 and target.ndim == 3
    n, c, h, w = predict.shape
    assert target.shape == (n, h, w)
    hw = h * w

    # Free reshapes only (pixels stay contiguous on the lane axis).
    x = predict.reshape(n, c, hw)
    t = target.reshape(n, 1, hw).astype(jnp.int32)

    # --- Pixel-tile sizing: temporaries-aware VMEM budget ---------------------
    # Per-pixel bytes: double-buffered logit tile (2*itemsize*c) + ~5 full-tile
    # f32/bool temporaries (5*4*c) + class-iota scratch (4*c) + double-buffered
    # int32 target + sum/cnt blocks (~32 B).  Conservative, so the derived cap
    # stays inside `vmem_budget` and well under v7x's 64 MiB physical VMEM.
    itemsize = jnp.dtype(predict.dtype).itemsize
    per_pixel_bytes = c * (2 * itemsize + 5 * 4 + 4) + 32
    cap = max(128, (vmem_budget // per_pixel_bytes) // 128 * 128)
    if tile_pixels is None:
        tp = cap                                        # default: as large as fits
    else:
        tp = min(max(128, (tile_pixels // 128) * 128), cap)
    if hw <= tp:
        tp = hw
        num_tiles = 1
    else:
        num_tiles = -(-hw // tp)                        # ceil; ragged tail masked in-kernel

    # --- Mode selection --------------------------------------------------------
    # n == 1: only one batch to shard across v7x's two TensorCores, so write
    # per-tile partial sums/counts and make BOTH grid axes parallel.
    use_partials = (n == 1)
    accumulate = not use_partials

    kernel = functools.partial(_ce2d_kernel, ignore_label=ignore_label,
                               num_pixels=hw, accumulate=accumulate)

    out_cols = tp if accumulate else num_tiles * tp
    out_idx = (lambda b, i: (b, 0, 0)) if accumulate else (lambda b, i: (b, 0, i))
    dims = ("parallel", "arbitrary") if accumulate else ("parallel", "parallel")
    scratch_shapes = [pltpu.VMEM((c, tp), jnp.int32)] if accumulate else []

    # VMEM limit: estimated footprint + headroom, capped below v7x physical VMEM.
    est = (2 * c * tp * itemsize                # double-buffered logit tile
           + 5 * c * tp * 4                     # in-kernel full-tile temporaries
           + (c * tp * 4 if accumulate else 0)  # class-iota scratch
           + 2 * 2 * tp * 4                     # double-buffered int32 target
           + 4 * tp * 4)                        # sum/cnt output blocks
    vmem_limit = min(48 << 20, max(32 << 20, est + (8 << 20)))

    sum_part, cnt_part = pl.pallas_call(
        kernel,
        out_shape=(jax.ShapeDtypeStruct((n, 1, out_cols), jnp.float32),
                   jax.ShapeDtypeStruct((n, 1, out_cols), jnp.float32)),
        grid=(n, num_tiles),
        in_specs=[
            pl.BlockSpec((1, c, tp), lambda b, i: (b, 0, i)),
            pl.BlockSpec((1, 1, tp), lambda b, i: (b, 0, i)),
        ],
        out_specs=(
            pl.BlockSpec((1, 1, tp), out_idx),
            pl.BlockSpec((1, 1, tp), out_idx),
        ),
        scratch_shapes=scratch_shapes,
        compiler_params=pltpu.CompilerParams(
            dimension_semantics=dims,
            vmem_limit_bytes=vmem_limit),
    )(x, t)

    total = jnp.sum(sum_part)
    # Counts are exact small integers per lane; sum them as int32 for exactness.
    cnt = jnp.sum(cnt_part.astype(jnp.int32)).astype(jnp.float32)
    if size_average:
        # PyTorch returns zeros(1) when there is no valid target; mirror with 0.0.
        return jnp.where(cnt > 0, total / jnp.maximum(cnt, 1.0), 0.0)
    return total


def _reference(predict, target, ignore_label=255, size_average=True):
    """Pure-JAX reference mirroring F.cross_entropy with masking."""
    n, c, h, w = predict.shape
    x = jnp.transpose(predict, (0, 2, 3, 1)).reshape(-1, c).astype(jnp.float32)
    t = target.reshape(-1).astype(jnp.int32)
    valid = (t >= 0) & (t != ignore_label)
    logp = jax.nn.log_softmax(x, axis=-1)
    nll = -jnp.take_along_axis(logp, jnp.where(valid, t, 0)[:, None], axis=-1)[:, 0]
    nll = jnp.where(valid, nll, 0.0)
    cnt = jnp.sum(valid)
    return jnp.where(cnt > 0, jnp.sum(nll) / jnp.maximum(cnt, 1), 0.0) if size_average \
        else jnp.sum(nll)


if __name__ == "__main__":
    key = jax.random.PRNGKey(0)
    k1, k2, k3 = jax.random.split(key, 3)

    # Basic case: batch=2, classes=4, 16x16 (accumulator mode, single tile).
    n, c, h, w = 2, 4, 16, 16
    predict = jax.random.normal(k1, (n, c, h, w), dtype=jnp.float32)
    target = jax.random.randint(k2, (n, h, w), 0, c, dtype=jnp.int32)
    ignore_mask = jax.random.bernoulli(k3, 0.2, (n, h, w))
    target = jnp.where(ignore_mask, 255, target)

    loss = jax.block_until_ready(cross_entropy_2d(predict, target))
    ref = jax.block_until_ready(_reference(predict, target))
    assert jnp.allclose(loss, ref, atol=1e-5, rtol=1e-5), (loss, ref)

    # size_average=False path.
    loss_sum = jax.block_until_ready(cross_entropy_2d(predict, target, size_average=False))
    ref_sum = jax.block_until_ready(_reference(predict, target, size_average=False))
    assert jnp.allclose(loss_sum, ref_sum, atol=1e-4, rtol=1e-5), (loss_sum, ref_sum)

    # All-ignored targets -> 0.0 (mirrors PyTorch's zeros(1)).
    t_ign = jnp.full((n, h, w), 255, dtype=jnp.int32)
    loss_ign = jax.block_until_ready(cross_entropy_2d(predict, t_ign))
    assert jnp.allclose(loss_ign, 0.0), loss_ign

    # Multi-tile + ragged-tail path, accumulator mode (hw = 576 = 4*128 + 64).
    h2 = w2 = 24
    predict2 = jax.random.normal(k1, (n, c, h2, w2), dtype=jnp.float32)
    target2 = jax.random.randint(k2, (n, h2, w2), 0, c, dtype=jnp.int32)
    target2 = jnp.where(jax.random.bernoulli(k3, 0.2, (n, h2, w2)), 255, target2)
    loss2 = jax.block_until_ready(cross_entropy_2d(predict2, target2, tile_pixels=128))
    ref2 = jax.block_until_ready(_reference(predict2, target2))
    assert jnp.allclose(loss2, ref2, atol=1e-5, rtol=1e-5), (loss2, ref2)

    # Batch = 1: per-tile partial-output mode (both grid axes parallel).
    predict3 = predict2[:1]
    target3 = target2[:1]
    loss3 = jax.block_until_ready(cross_entropy_2d(predict3, target3, tile_pixels=128))
    ref3 = jax.block_until_ready(_reference(predict3, target3))
    assert jnp.allclose(loss3, ref3, atol=1e-5, rtol=1e-5), (loss3, ref3)

    print("KERNEL_OK")
</pallas_src>

<mosaic_0001>
module attributes {stable_mosaic.version = 11 : i64} {
  func.func @_ce2d_kernel(%arg0: i32, %arg1: i32, %arg2: memref<1x4x256xf32, #tpu.memory_space<vmem>>, %arg3: memref<1x1x256xi32, #tpu.memory_space<vmem>>, %arg4: memref<1x1x256xf32, #tpu.memory_space<vmem>>, %arg5: memref<1x1x256xf32, #tpu.memory_space<vmem>>, %arg6: memref<4x256xi32, #tpu.memory_space<vmem>>) attributes {dimension_semantics = [#tpu.dimension_semantics<parallel>, #tpu.dimension_semantics<arbitrary>], iteration_bounds = array<i64: 2, 1>, scalar_prefetch = 0 : i64, scratch_operands = 1 : i64, tpu.core_type = #tpu.core_type<tc>, window_params = [{transform_indices = @transform_0, window_bounds = array<i64: 1, 4, 256>}, {transform_indices = @transform_1, window_bounds = array<i64: 1, 1, 256>}, {transform_indices = @transform_2, window_bounds = array<i64: 1, 1, 256>}, {transform_indices = @transform_3, window_bounds = array<i64: 1, 1, 256>}]} {
    %c0_i32 = arith.constant 0 : i32
    %0 = arith.cmpi eq, %arg1, %c0_i32 : i32
    %1 = arith.extui %0 : i1 to i32
    %c0_i32_0 = arith.constant 0 : i32
    %2 = arith.cmpi ne, %1, %c0_i32_0 : i32
    scf.if %2 {
      %cst_27 = arith.constant 0.000000e+00 : f32
      %49 = vector.broadcast %cst_27 : f32 to vector<1x1x256xf32>
      %c0_28 = arith.constant 0 : index
      %c0_29 = arith.constant 0 : index
      %c0_30 = arith.constant 0 : index
      %50 = vector.load %arg4[%c0_28, %c0_29, %c0_30] : memref<1x1x256xf32, #tpu.memory_space<vmem>>, vector<1x1x256xf32>
      tpu.vector_store %arg4[%c0_28, %c0_29, %c0_30], %49 {strides = array<i32>} : memref<1x1x256xf32, #tpu.memory_space<vmem>>, vector<1x1x256xf32>,
      %cst_31 = arith.constant 0.000000e+00 : f32
      %51 = vector.broadcast %cst_31 : f32 to vector<1x1x256xf32>
      %c0_32 = arith.constant 0 : index
      %c0_33 = arith.constant 0 : index
      %c0_34 = arith.constant 0 : index
      %52 = vector.load %arg5[%c0_32, %c0_33, %c0_34] : memref<1x1x256xf32, #tpu.memory_space<vmem>>, vector<1x1x256xf32>
      tpu.vector_store %arg5[%c0_32, %c0_33, %c0_34], %51 {strides = array<i32>} : memref<1x1x256xf32, #tpu.memory_space<vmem>>, vector<1x1x256xf32>,
      %53 = tpu.iota {dimensions = array<i32: 0>} : vector<4x256xi32>
      %c0_35 = arith.constant 0 : index
      %c0_36 = arith.constant 0 : index
      %54 = vector.load %arg6[%c0_35, %c0_36] : memref<4x256xi32, #tpu.memory_space<vmem>>, vector<4x256xi32>
      tpu.vector_store %arg6[%c0_35, %c0_36], %53 {strides = array<i32>} : memref<4x256xi32, #tpu.memory_space<vmem>>, vector<4x256xi32>,
    } else {
    }
    %c0 = arith.constant 0 : index
    %c0_1 = arith.constant 0 : index
    %3 = vector.load %arg6[%c0, %c0_1] : memref<4x256xi32, #tpu.memory_space<vmem>>, vector<4x256xi32>
    %c0_2 = arith.constant 0 : index
    %c0_3 = arith.constant 0 : index
    %c0_4 = arith.constant 0 : index
    %4 = vector.load %arg2[%c0_2, %c0_3, %c0_4] : memref<1x4x256xf32, #tpu.memory_space<vmem>>, vector<1x4x256xf32>
    %5 = vector.shape_cast %4 : vector<1x4x256xf32> to vector<4x256xf32>
    %c0_5 = arith.constant 0 : index
    %c0_6 = arith.constant 0 : index
    %c0_7 = arith.constant 0 : index
    %6 = vector.load %arg3[%c0_5, %c0_6, %c0_7] : memref<1x1x256xi32, #tpu.memory_space<vmem>>, vector<1x1x256xi32>
    %7 = vector.shape_cast %6 : vector<1x1x256xi32> to vector<1x256xi32>
    %c256_i32 = arith.constant 256 : i32
    %8 = arith.muli %arg1, %c256_i32 : i32
    %9 = tpu.iota {dimensions = array<i32: 1>} : vector<1x256xi32>
    %10 = vector.broadcast %8 : i32 to vector<1x256xi32>
    %11 = arith.addi %10, %9 : vector<1x256xi32>
    %c256_i32_8 = arith.constant 256 : i32
    %12 = vector.broadcast %c256_i32_8 : i32 to vector<1x256xi32>
    %13 = arith.cmpi slt, %11, %12 : vector<1x256xi32>
    %c0_i32_9 = arith.constant 0 : i32
    %14 = vector.broadcast %c0_i32_9 : i32 to vector<1x256xi32>
    %15 = arith.cmpi sge, %7, %14 : vector<1x256xi32>
    %16 = arith.andi %13, %15 : vector<1x256xi1>
    %c255_i32 = arith.constant 255 : i32
    %17 = vector.broadcast %c255_i32 : i32 to vector<1x256xi32>
    %18 = arith.cmpi ne, %7, %17 : vector<1x256xi32>
    %19 = arith.andi %16, %18 : vector<1x256xi1>
    %cst = arith.constant dense<0xFF800000> : vector<256xf32>
    %20 = vector.multi_reduction <maximumf>, %5, %cst [0] : vector<4x256xf32> to vector<256xf32>
    %21 = vector.shape_cast %20 : vector<256xf32> to vector<1x256xf32>
    %22 = vector.broadcast %21 : vector<1x256xf32> to vector<4x256xf32>
    %23 = arith.subf %5, %22 : vector<4x256xf32>
    %24 = math.exp %23 : vector<4x256xf32>
    %cst_10 = arith.constant dense<0.000000e+00> : vector<256xf32>
    %25 = vector.multi_reduction <add>, %24, %cst_10 [0] : vector<4x256xf32> to vector<256xf32>
    %26 = vector.shape_cast %25 : vector<256xf32> to vector<1x256xf32>
    %c0_i32_11 = arith.constant 0 : i32
    %27 = vector.broadcast %c0_i32_11 : i32 to vector<1x256xi32>
    %28 = arith.select %19, %7, %27 : vector<1x256xi1>, vector<1x256xi32>
    %29 = vector.broadcast %28 : vector<1x256xi32> to vector<4x256xi32>
    %30 = arith.cmpi eq, %3, %29 : vector<4x256xi32>
    %cst_12 = arith.constant 0.000000e+00 : f32
    %31 = vector.broadcast %cst_12 : f32 to vector<4x256xf32>
    %32 = arith.select %30, %23, %31 : vector<4x256xi1>, vector<4x256xf32>
    %cst_13 = arith.constant dense<0.000000e+00> : vector<256xf32>
    %33 = vector.multi_reduction <add>, %32, %cst_13 [0] : vector<4x256xf32> to vector<256xf32>
    %34 = vector.shape_cast %33 : vector<256xf32> to vector<1x256xf32>
    %35 = math.log %26 : vector<1x256xf32>
    %36 = arith.subf %35, %34 : vector<1x256xf32>
    %cst_14 = arith.constant 0.000000e+00 : f32
    %37 = vector.broadcast %cst_14 : f32 to vector<1x256xf32>
    %38 = arith.select %19, %36, %37 : vector<1x256xi1>, vector<1x256xf32>
    %39 = arith.extui %19 : vector<1x256xi1> to vector<1x256xi32>
    %40 = arith.sitofp %39 : vector<1x256xi32> to vector<1x256xf32>
    %c0_15 = arith.constant 0 : index
    %c0_16 = arith.constant 0 : index
    %c0_17 = arith.constant 0 : index
    %41 = vector.load %arg4[%c0_15, %c0_16, %c0_17] : memref<1x1x256xf32, #tpu.memory_space<vmem>>, vector<1x1x256xf32>
    %42 = vector.shape_cast %38 : vector<1x256xf32> to vector<1x1x256xf32>
    %43 = arith.addf %41, %42 : vector<1x1x256xf32>
    %c0_18 = arith.constant 0 : index
    %c0_19 = arith.constant 0 : index
    %c0_20 = arith.constant 0 : index
    %44 = vector.load %arg4[%c0_18, %c0_19, %c0_20] : memref<1x1x256xf32, #tpu.memory_space<vmem>>, vector<1x1x256xf32>
    tpu.vector_store %arg4[%c0_18, %c0_19, %c0_20], %43 {strides = array<i32>} : memref<1x1x256xf32, #tpu.memory_space<vmem>>, vector<1x1x256xf32>,
    %c0_21 = arith.constant 0 : index
    %c0_22 = arith.constant 0 : index
    %c0_23 = arith.constant 0 : index
    %45 = vector.load %arg5[%c0_21, %c0_22, %c0_23] : memref<1x1x256xf32, #tpu.memory_space<vmem>>, vector<1x1x256xf32>
    %46 = vector.shape_cast %40 : vector<1x256xf32> to vector<1x1x256xf32>
    %47 = arith.addf %45, %46 : vector<1x1x256xf32>
    %c0_24 = arith.constant 0 : index
    %c0_25 = arith.constant 0 : index
    %c0_26 = arith.constant 0 : index
    %48 = vector.load %arg5[%c0_24, %c0_25, %c0_26] : memref<1x1x256xf32, #tpu.memory_space<vmem>>, vector<1x1x256xf32>
    tpu.vector_store %arg5[%c0_24, %c0_25, %c0_26], %47 {strides = array<i32>} : memref<1x1x256xf32, #tpu.memory_space<vmem>>, vector<1x1x256xf32>,
    return
  }
  func.func @transform_0(%arg0: i32, %arg1: i32) -> (i32, i32, i32) {
    %c0_i32 = arith.constant 0 : i32
    %c0_i32_0 = arith.constant 0 : i32
    return %arg0, %c0_i32, %arg1 : i32, i32, i32
  }
  func.func @transform_1(%arg0: i32, %arg1: i32) -> (i32, i32, i32) {
    %c0_i32 = arith.constant 0 : i32
    %c0_i32_0 = arith.constant 0 : i32
    return %arg0, %c0_i32, %arg1 : i32, i32, i32
  }
  func.func @transform_2(%arg0: i32, %arg1: i32) -> (i32, i32, i32) {
    %c0_i32 = arith.constant 0 : i32
    %c0_i32_0 = arith.constant 0 : i32
    %c0_i32_1 = arith.constant 0 : i32
    return %arg0, %c0_i32, %c0_i32_0 : i32, i32, i32
  }
  func.func @transform_3(%arg0: i32, %arg1: i32) -> (i32, i32, i32) {
    %c0_i32 = arith.constant 0 : i32
    %c0_i32_0 = arith.constant 0 : i32
    %c0_i32_1 = arith.constant 0 : i32
    return %arg0, %c0_i32, %c0_i32_0 : i32, i32, i32
  }
}

</mosaic_0001>

<bundles_post_ra>
// kernel: tpu_custom_call.1
= control target key start
LH: loop header
LB: loop body
LE: loop exit
PB: predicated region body
PF: predicated region fallthrough
CT: control target
= control target key end

     0   :  { %9 = vsyncpa [#allocation4], 0  ;;  %s1273_s0 = inlined_call_operand.hbm [shape: f32[2,4,256], index: 0, kind: input, shape index: {}]   ;;  %s1274_s1 = inlined_call_operand.hbm [shape: s32[2,1,256], index: 1, kind: input, shape index: {}]   ;;  %s1275_s2 = inlined_call_operand.hbm [shape: f32[2,1,256], index: 2, kind: output, shape index: {0}]   ;;  %s1276_s3 = inlined_call_operand.hbm [shape: f32[2,1,256], index: 3, kind: output, shape index: {1}]  }
   0x1   :  { %11 = vsyncpa [#allocation4 + $0x1], 0 }
   0x2   :  { %12 = vsyncpa [#allocation7], 0 }
   0x3   :  { %14 = vsyncpa [#allocation7 + $0x1], 0 }
   0x4   :  { %15 = vsyncpa [#allocation5], 0 }
   0x5   :  { %17 = vsyncpa [#allocation5 + $0x1], 0 }
   0x6   :  { %18 = vsyncpa [#allocation10], 0 }
   0x7   :  { %20 = vsyncpa [#allocation10 + $0x1], 0  ;;  %s949_s12 = smov 0   ;;  %s951_s13 = smov 0  }
   0x8   :  { %s953_s14 = smov 0   ;;  %s955_s15 = smov 0  }
   0x9   :  { %s957_s16 = smov 0   ;;  %s959_s17 = smov 0  }
   0xa LB: > { %s629_s18 = sadd.s32 4294967295, %s919_s17   ;;  %s630_s19 = sadd.s32 4294967294, %s919_s17   ;;  %s919_s17 = sphi %s959_s17, %s26_s17   ;;  %s915_s16 = sphi %s957_s16, %s1302_s16   ;;  %s911_s15 = sphi %s955_s15, %s1301_s15   ;;  %s907_s14 = sphi %s953_s14, %s1300_s14   ;;  %s903_s13 = sphi %s951_s13, %s1299_s13   ;;  %s899_s12 = sphi %s949_s12, %s1298_s12  }
   0xb   : > { %s38_s20 = sadd.s32 1, %s915_s16  ;;  %s47_s21 = sadd.s32 1, %s907_s14 }
   0xc   : > { %p40_p0 = scmp.ge.s32.totalorder %s38_s20, 2  ;;  %p54_p1 = scmp.ne.s32.totalorder %s907_s14, %s903_s13 }
   0xd   : > { %p55_p2 = scmp.eq.s32.totalorder %s919_s17, 0  ;;  %p60_p3 = scmp.ne.s32.totalorder %s903_s13, %s899_s12 }
   0xe   : > { %s1304_s20 = smov (%p40_p0, %s38_s20), 0  ;;  %p61_p5 = scmp.eq.s32.totalorder %s629_s18, 0 }
   0xf   : > { %p990_p4 = por %p55_p2, %p54_p1  ;;  %s42_s23 = ssub.s32 %s915_s16, %s1304_s20 }
  0x10   : > { %p112_p6 = scmp.eq.s32.totalorder %s629_s18, 1  ;;  %p45_p7 = scmp.eq.s32.totalorder %s42_s23, 0 }
  0x11   : > { %p996_p8 = por %p61_p5, %p60_p3  ;;  %p118_p10 = scmp.eq.s32.totalorder %s630_s19, 1 }
  0x12   : > { %p1000_p9 = por %p112_p6, %p54_p1  ;;  %p680_p13 = scmp.lt.s32.totalorder %s919_s17, 2 }
  0x13   : > { %s1280_s24 = scalar_select %p996_p8, 1, 0 }
  0x14   : > { %s1281_s25 = scalar_select %p1000_p9, 1, 0 }
  0x15   : > { %s1005_s26 = scalar_select %p45_p7, %s907_s14, %s47_s21  }
  0x16   : > { %p1007_p11 = por %p118_p10, %p60_p3  ;;  %s1014_s28 = sand.u32 1, %s907_s14  }
  0x17   : > { %s633_s29 = sshll.u32 %s1014_s28, 3  ;;  %s654_s30 = sshll.u32 %s915_s16, 7 }
  0x18   : > { %s1282_s27 = scalar_select %p1007_p11, 1, 0 }
  0x19   : > { %s1021_s6 = scalar_lea.hbm %s1273_s0, %s654_s30  ;;  %s168_s7 = scalar_lea.vmem [#allocation3], %s633_s29 }
  0x1a   : > { %s178_s8 = sshll.u32 %s168_s7, 4  ;;  %p1027_p0 = pnand %p680_p13, %p990_p4  ;;  %s1023_s8 = int_to_ptr.vmem [resolvable:$true] %s178_s8 }
  0x1b   : > { %s165_s10 = scalar_lea.sflag [#allocation4], %s1014_s28  ;;  %s741_s11 = scalar_lea.hbm %s1021_s6, 128 }
  0x1c   : > { %p742_p3 = scmp.ne.s32.totalorder %s1021_s6, %s741_s11  ;;  %p743_p5 = pneg %p1027_p0 }
  0x1d   : > { %s746_s21 = scalar_lea.hbm %s1273_s0, 256  ;;  %p747_p4 = scmp.lt.u32.totalorder %s1021_s6, %s1273_s0 }
  0x1e   : > { %p744_p6 = pnand %p743_p5, %p742_p3  ;;  %p748_p10 = scmp.lt.u32.totalorder %s746_s21, %s741_s11 }
  0x1f   : > { %p750_p12 = scmp.lt.u32.totalorder %s741_s11, %s1021_s6 }
  0x20   : > { %p745_p7 = pneg %p744_p6  ;;  %p749_p13 = por %p748_p10, %p747_p4 }
  0x22   : > { %p751_p1 = por %p750_p12, %p749_p13 }
  0x24   : > { %p752_p2 = pnand %p751_p1, %p745_p7 }
  0x26   : > { %755 = shalt.err (!%p752_p2)
}
  0x27   : > { %s756_s29 = scalar_lea.vmem %s1023_s8, 128  ;;  %s921_s30 = smov [#allocation3]  }
  0x28   : > { %p757_p3 = scmp.ne.s32.totalorder %s1023_s8, %s756_s29  ;;  %s761_s4 = sshll.u32 %s921_s30, 4  ;;  %s762_s4 = int_to_ptr.vmem [resolvable:$false] %s761_s4 }
  0x29   : > { %s763_s5 = scalar_lea.vmem %s762_s4, 256  ;;  %p764_p9 = scmp.lt.s32.totalorder %s1023_s8, %s762_s4 }
  0x2a   : > { %p759_p6 = pnand %p757_p3, %p743_p5  ;;  %p765_p4 = scmp.lt.s32.totalorder %s763_s5, %s756_s29 }
  0x2c   : > { %p760_p11 = pneg %p759_p6  ;;  %p766_p10 = por %p765_p4, %p764_p9 }
  0x2e   : > { %p767_p12 = pnand %p766_p10, %p760_p11 }
  0x30   : > { %770 = shalt.err (!%p767_p12)
}
  0x31   : > { %669 = dma.hbm_to_vmem [thread:$0]  (!%p1027_p0), %s1021_s6, 128, %s1023_s8, %s165_s10  }
  0x32   : > { %p1284_p1 = scmp.lt.s32.totalorder %s919_s17, 3  ;;  %p1285_p2 = scmp.ge.s32.totalorder %s919_s17, 1 }
  0x33   : > { %s636_s11 = sshll.u32 %s1014_s28, 1  ;;  %s655_s18 = sshll.u32 %s915_s16, 5 }
  0x34   : > { %p1063_p7 = pnand %p1285_p2, %p1284_p1  ;;  %s1072_s22 = scalar_lea.hbm %s1274_s1, %s655_s18 }
  0x35   : > { %s189_s23 = scalar_lea.vmem [#allocation6], %s636_s11  ;;  %s186_s6 = scalar_lea.sflag [#allocation7], %s1014_s28 }
  0x36   : > { %s1286_s7 = scalar_select %p1063_p7, 1, 0 }
  0x37   : > { %s199_s29 = sshll.u32 %s189_s23, 4  ;;  %s771_s8 = scalar_lea.hbm %s1072_s22, 32  ;;  %s200_s29 = int_to_ptr.vmem [resolvable:$true] %s199_s29 }
  0x38   : > { %p772_p9 = scmp.ne.s32.totalorder %s1072_s22, %s771_s8  ;;  %s776_s4 = scalar_lea.hbm %s1274_s1, 64 }
  0x39   : > { %p777_p3 = scmp.lt.u32.totalorder %s1072_s22, %s1274_s1  ;;  %p778_p6 = scmp.lt.u32.totalorder %s776_s4, %s771_s8 }
  0x3a   : > { %p774_p11 = pnand %p772_p9, %p743_p5  ;;  %p780_p10 = scmp.lt.u32.totalorder %s771_s8, %s1072_s22 }
  0x3b   : > { %p779_p4 = por %p778_p6, %p777_p3 }
  0x3c   : > { %p775_p13 = pneg %p774_p11 }
  0x3d   : > { %p781_p12 = por %p780_p10, %p779_p4 }
  0x3f   : > { %p782_p1 = pnand %p781_p12, %p775_p13 }
  0x41   : > { %785 = shalt.err (!%p782_p1)
}
  0x42   : > { %s786_s28 = scalar_lea.vmem %s200_s29, 32  ;;  %s922_s11 = smov [#allocation6]  }
  0x43   : > { %p787_p2 = scmp.ne.s32.totalorder %s200_s29, %s786_s28  ;;  %s791_s19 = sshll.u32 %s922_s11, 4  ;;  %s792_s19 = int_to_ptr.vmem [resolvable:$false] %s791_s19 }
  0x44   : > { %s793_s21 = scalar_lea.vmem %s792_s19, 64  ;;  %p794_p8 = scmp.lt.s32.totalorder %s200_s29, %s792_s19 }
  0x45   : > { %p789_p9 = pnand %p787_p2, %p743_p5  ;;  %p795_p7 = scmp.lt.s32.totalorder %s793_s21, %s786_s28 }
  0x47   : > { %p790_p11 = pneg %p789_p9  ;;  %p796_p3 = por %p795_p7, %p794_p8 }
  0x49   : > { %p797_p6 = pnand %p796_p3, %p790_p11 }
  0x4b   : > { %800 = shalt.err (!%p797_p6)
}
  0x4c   : > { %672 = dma.hbm_to_vmem [thread:$0]  (!%p1027_p0), %s1072_s22, 32, %s200_s29, %s186_s6  }
  0x4d   : > { %p1287_p13 = scmp.ne.s32.totalorder %s1286_s7, 0 }
  0x4e   : > { %s1097_s23 = sand.u32 (!%p1287_p13), 1, %s903_s13   ;;  %p1288_p5 = scmp.ne.s32.totalorder (!%p1287_p13), %s1280_s24, 0 }
  0x4f   : > { %208 = sbr.rel (%p1287_p13) target bundleno = 191 (0xbf), region = 28  ;;  %s640_s8 = sshll.u32 (!%p1287_p13), %s1097_s23, 3 }
  0x50   : > { %s211_s10 = scalar_lea.sflag (!%p1287_p13), [#allocation4], %s1097_s23  ;;  %s214_s30 = scalar_lea.vmem (!%p1287_p13), [#allocation3], %s640_s8 }
  0x56   : > { %882 = dma.done.wait (%p1288_p5), %s211_s10, 128  }
  0x57   : > { %884 = vsyncadd (%p1288_p5), %s211_s10, 4294967168  ;;  %s641_s9 = sshll.u32 %s1097_s23, 1  ;;  %s220_s7 = scalar_lea.sflag [#allocation7], %s1097_s23 }
  0x58   : > { %s223_s22 = scalar_lea.vmem [#allocation6], %s641_s9 }
  0x59   : > { %886 = dma.done.wait (%p1288_p5), %s220_s7, 32  }
  0x5a   : > { %888 = vsyncadd (%p1288_p5), %s220_s7, 4294967264  ;;  %v262_v0 = vlaneseq  ;;  %s1117_s29 = scalar_lea.vmem [#allocation8], %s641_s9  ;;  %v923_v3 = vmov 0.0   ;;  %s1122_s6 = scalar_lea.vmem [#allocation9], %s641_s9  ;;  %vm321_vm1 = vcmask 1043456   ;;  %v1131_v6 = vld [vmem:[%s214_s30] sm:$0xff] }
  0x5b   : > { %v280_v7 = vld [vmem:[%s223_s22] sm:$0x3]  ;;  %v924_v8 = vmov 1966171168   ;;  %v319_v10 = vcombine.high %v1131_v6, %v1131_v6  ;;  %v322_v11 = vsel %vm321_vm1, %v1131_v6, -inf  ;;  %v925_v12 = vmov 0  }
  0x5c   : > { %vm1111_vm0 = vcmp.lt.s32.totalorder %v262_v0, 256  ;;  %v1115_v2 = vshrl.u32 %v262_v0, 7  ;;  %v415_v9 = vunpack.c.l.s4 %v924_v8  ;;  %vm290_vm2 = vcmp.ge.s32.totalorder %v280_v7, 0  ;;  %s656_s24 = sshll.u32 %s911_s15, 5  ;;  %s490_s4 = sshll.u32 %s1122_s6, 4  ;;  %s1172_s4 = int_to_ptr.vmem [resolvable:$true] %s490_s4 }
  0x5d   : > { %266 = vst.msk [vmem:[%s1117_s29] sm:$0x3] %vm1111_vm0, %v923_v3  ;;  %267 = vst.msk [vmem:[%s1122_s6] sm:$0x3] %vm1111_vm0, %v923_v3  ;;  %vm304_vm3 = vcmp.ne.s32.totalorder %v280_v7, 255  ;;  %v291_v13 = vsel %vm290_vm2, 1, %v925_v12  ;;  %s1170_s28 = scalar_lea.hbm %s1276_s3, %s656_s24 }
  0x5e   : > { %v1128_v4 = vsub.s32 0, %v1115_v2  ;;  %v298_v5 = vsub.s32 1, %v1115_v2  ;;  %v305_v14 = vsel %vm304_vm3, 1, %v925_v12  ;;  %v323_v15 = vrot.slane %v322_v11, 4  ;;  %s462_s11 = scalar_lea.sflag [#allocation10], %s1097_s23  ;;  %s801_s19 = scalar_lea.vmem %s1172_s4, 32 }
  0x5f   : > { %v329_v21 = vsel %vm321_vm1, %v319_v10, -inf  ;;  %v416_v22 = vunpack.c.0.s8 %v415_v9  ;;  %v926_v32 = vmov 839922192   ;;  %p802_p8 = scmp.ne.s32.totalorder %s1172_s4, %s801_s19  ;;  %p1295_p0 = scmp.ne.s32.totalorder %s1281_s25, 0 }
  0x60   : > { %v295_v16 = vrot.slane %v291_v13, %v1128_v4  ;;  %v299_v17 = vrot.slane %v291_v13, %v298_v5  ;;  %v309_v18 = vrot.slane %v305_v14, %v1128_v4  ;;  %v313_v19 = vrot.slane %v305_v14, %v298_v5  ;;  %s927_s21 = smov [#allocation9]  }
  0x61   : > { %v324_v20 = vmax.f32 %v322_v11, %v323_v15  ;;  %v330_v25 = vrot.slane %v329_v21, 4  ;;  %v1151_v30 = vsub.s32 %v416_v22, %v1115_v2  ;;  %v271_v33 = vunpack.c.l.s4 %v926_v32  ;;  %p803_p7 = pnand %p802_p8, %p1295_p0  ;;  %s805_s8 = sshll.u32 %s927_s21, 4  ;;  %s806_s8 = int_to_ptr.vmem [resolvable:$false] %s805_s8 }
  0x62   : > { %vm300_vm4 = vcmp.ne.s32.totalorder %v295_v16, 0  ;;  %vm301_vm5 = vcmp.ne.s32.totalorder %v299_v17, 0  ;;  %vm314_vm6 = vcmp.ne.s32.totalorder %v309_v18, 0  ;;  %vm315_vm7 = vcmp.ne.s32.totalorder %v313_v19, 0  ;;  %s807_s10 = scalar_lea.vmem %s806_s8, 64  ;;  %p808_p10 = scmp.lt.s32.totalorder %s1172_s4, %s806_s8 }
  0x63   : > { %vm1140_vm8 = vmand %vm300_vm4, %vm314_vm6  ;;  %v325_v24 = vrot.slane %v324_v20, 2  ;;  %v331_v29 = vmax.f32 %v329_v21, %v330_v25  ;;  %v363_v37 = vrot.slane %v280_v7, %v1128_v4  ;;  %v367_v38 = vrot.slane %v280_v7, %v298_v5  ;;  %p804_p4 = pneg %p803_p7  ;;  %p809_p12 = scmp.lt.s32.totalorder %s807_s10, %s801_s19 }
  0x64   : > { %v644_v26 = vsel %vm1140_vm8, 1.0, %v923_v3  ;;  %vm1146_vm9 = vmand %vm301_vm5, %vm315_vm7  ;;  %v435_v41 = vld [vmem:[%s1122_s6] sm:$0x3]  ;;  %v272_v42 = vunpack.c.0.s8 %v271_v33 }
  0x65   : > { %v326_v28 = vmax.f32 %v324_v20, %v325_v24  ;;  %v645_v31 = vsel %vm1146_vm9, 1.0, %v923_v3  ;;  %v332_v35 = vrot.slane %v331_v29, 2  ;;  %v368_v46 = vsel %vm1140_vm8, %v363_v37, 0  ;;  %p810_p1 = por %p809_p12, %p808_p10 }
  0x66   : > { %v438_v36 = vcombine.low %v644_v26, %v645_v31  ;;  %v369_v47 = vsel %vm1146_vm9, %v367_v38, 0  ;;  %v275_v50 = vsub.s32 %v272_v42, %v1115_v2  ;;  %v373_v52 = vrot.slane %v368_v46, %v1128_v4 }
  0x67   : > { %v327_v34 = vrot.slane %v326_v28, 1  ;;  %v333_v39 = vmax.f32 %v331_v29, %v332_v35  ;;  %v377_v53 = vrot.slane %v369_v47, %v1128_v4  ;;  %p811_p2 = pnand %p810_p1, %p804_p4 }
  0x68   : > { %v445_v40 = vrot.slane %v438_v36, %v1151_v30 }
  0x69   : > { %v328_v43 = vmax.f32 %v326_v28, %v327_v34  ;;  %v334_v44 = vrot.slane %v333_v39, 1 }
  0x6a   : > { %v452_v45 = vrot.slane %v445_v40, %v1151_v30 }
  0x6b   : > { %v335_v48 = vmax.f32 %v333_v39, %v334_v44 }
  0x6c   : > { %v454_v49 = vadd.f32 %v452_v45, %v435_v41 }
  0x6d   : > { %v338_v51 = vcombine.low %v328_v43, %v335_v48 }
  0x6e   : > { %455 = vst.msk [vmem:[%s1122_s6] sm:$0x3] %vm1111_vm0, %v454_v49 }
  0x6f   : > { %814 = shalt.err (!%p811_p2)
}
  0x70   : > { %s815_s30 = scalar_lea.hbm %s1170_s28, 32  ;;  %s819_s22 = scalar_lea.hbm %s1276_s3, 64 }
  0x71   : > { %p816_p9 = scmp.ne.s32.totalorder %s1170_s28, %s815_s30  ;;  %p820_p6 = scmp.lt.u32.totalorder %s1170_s28, %s1276_s3 }
  0x72   : > { %p821_p13 = scmp.lt.u32.totalorder %s819_s22, %s815_s30  ;;  %p823_p8 = scmp.lt.u32.totalorder %s815_s30, %s1170_s28 }
  0x73   : > { %p817_p11 = pnand %p816_p9, %p1295_p0 }
  0x74   : > { %p822_p5 = por %p821_p13, %p820_p6 }
  0x75   : > { %p818_p3 = pneg %p817_p11 }
  0x76   : > { %p824_p7 = por %p823_p8, %p822_p5 }
  0x78   : > { %p825_p4 = pnand %p824_p7, %p818_p3 }
  0x7a   : > { %828 = shalt.err (!%p825_p4)
}
  0x7b   : > { %663 = dma.vmem_to_hbm [thread:$0]  (%p1295_p0), %s1172_s4, 32, %s1170_s28, %s462_s11   ;;  %v340_v54 = vsub.f32 %v1131_v6, %v338_v51  ;;  %v276_v55 = vrot.slane %v1115_v2, %v275_v50  ;;  %v378_v57 = vcombine.low %v373_v52, %v377_v53  ;;  %v410_v40 = vld [vmem:[%s1117_s29] sm:$0x3] }
  0x7c   : > { %s476_s4 = sshll.u32 %s1117_s29, 4  ;;  %s1221_s11 = scalar_lea.hbm %s1275_s2, %s656_s24  ;;  %s1223_s4 = int_to_ptr.vmem [resolvable:$true] %s476_s4 }
  0x7d   : > { %v341_v56 = vmul.f32 1.442695, %v340_v54  ;;  %vm379_vm10 = vcmp.eq.s32.totalorder %v276_v55, %v378_v57  ;;  %s457_s19 = scalar_lea.sflag [#allocation5], %s1097_s23  ;;  %s829_s21 = scalar_lea.vmem %s1223_s4, 32 }
  0x7e   : > { %v380_v58 = vsel %vm379_vm10, %v340_v54, 0.0  ;;  %p830_p10 = scmp.ne.s32.totalorder %s1223_s4, %s829_s21  ;;  %s928_s15 = smov [#allocation8]  }
  0x7f   : > { %735 = vpow2.f32 %v341_v56  ;;  %v382_v59 = vcombine.high %v380_v58, %v380_v58  ;;  %v384_v61 = vsel %vm321_vm1, %v380_v58, 0.0  ;;  %s833_s8 = sshll.u32 %s928_s15, 4  ;;  %s834_s8 = int_to_ptr.vmem [resolvable:$false] %s833_s8 }
  0x80   : > { %v385_v5 = vrot.slane %v384_v61, 4  ;;  %p831_p12 = pnand %p830_p10, %p1295_p0  ;;  %s835_s10 = scalar_lea.vmem %s834_s8, 64 }
  0x81   : > { %v391_v3 = vsel %vm321_vm1, %v382_v59, 0.0  ;;  %p836_p2 = scmp.lt.s32.totalorder %s1223_s4, %s834_s8  ;;  %p837_p9 = scmp.lt.s32.totalorder %s835_s10, %s829_s21 }
  0x82   : > { %v392_v7 = vrot.slane %v391_v3, 4  ;;  %v386_v10 = vadd.f32 %v385_v5, %v384_v61  ;;  %p832_p1 = pneg %p831_p12 }
  0x83   : > { %p838_p11 = por %p837_p9, %p836_p2 }
  0x84   : > { %v393_v13 = vadd.f32 %v392_v7, %v391_v3  ;;  %v387_v16 = vrot.slane %v386_v10, 2 }
  0x85   : > { %p839_p3 = pnand %p838_p11, %p832_p1 }
  0x86   : > { %v394_v19 = vrot.slane %v393_v13, 2  ;;  %v388_v21 = vadd.f32 %v387_v16, %v386_v10 }
  0x88   : > { %v395_v22 = vadd.f32 %v394_v19, %v393_v13  ;;  %v389_v24 = vrot.slane %v388_v21, 1 }
  0x89   : > { %v736_v60 = vpop.eup %735 }
  0x8a   : > { %v344_v62 = vcombine.high %v736_v60, %v736_v60  ;;  %v346_v63 = vsel %vm321_vm1, %v736_v60, 0.0  ;;  %v396_v25 = vrot.slane %v395_v22, 1  ;;  %v390_v26 = vadd.f32 %v389_v24, %v388_v21 }
  0x8b   : > { %v347_v0 = vrot.slane %v346_v63, 4 }
  0x8c   : > { %v353_v4 = vsel %vm321_vm1, %v344_v62, 0.0  ;;  %v397_v29 = vadd.f32 %v396_v25, %v395_v22 }
  0x8d   : > { %v348_v6 = vadd.f32 %v347_v0, %v346_v63  ;;  %v354_v2 = vrot.slane %v353_v4, 4 }
  0x8f   : > { %v349_v8 = vrot.slane %v348_v6, 2  ;;  %v355_v9 = vadd.f32 %v354_v2, %v353_v4 }
  0x91   : > { %v350_v11 = vadd.f32 %v349_v8, %v348_v6  ;;  %v356_v12 = vrot.slane %v355_v9, 2 }
  0x93   : > { %v351_v14 = vrot.slane %v350_v11, 1  ;;  %v357_v15 = vadd.f32 %v356_v12, %v355_v9 }
  0x95   : > { %v352_v17 = vadd.f32 %v351_v14, %v350_v11  ;;  %v358_v18 = vrot.slane %v357_v15, 1 }
  0x97   : > { %v359_v20 = vadd.f32 %v358_v18, %v357_v15  ;;  %737 = vlog2.f32 %v352_v17 }
  0x99   : > { %739 = vlog2.f32 %v359_v20 }
  0xa1   : > { %v738_v28 = vpop.eup %737 }
  0xa2   : > { %v399_v31 = vmul.f32 0.6931472, %v738_v28 }
  0xa3   : > { %v740_v32 = vpop.eup %739 }
  0xa4   : > { %v401_v33 = vmul.f32 0.6931472, %v740_v32  ;;  %v402_v34 = vsub.f32 %v399_v31, %v390_v26 }
  0xa6   : > { %v403_v35 = vsub.f32 %v401_v33, %v397_v29  ;;  %v404_v36 = vsel %vm1140_vm8, %v402_v34, 0.0 }
  0xa8   : > { %v405_v37 = vsel %vm1146_vm9, %v403_v35, 0.0 }
  0xa9   : > { %v413_v38 = vcombine.low %v404_v36, %v405_v37 }
  0xab   : > { %v420_v39 = vrot.slane %v413_v38, %v1151_v30 }
  0xad   : > { %v427_v41 = vrot.slane %v420_v39, %v1151_v30 }
  0xaf   : > { %v429_v42 = vadd.f32 %v427_v41, %v410_v40 }
  0xb1   : > { %434 = vst.msk [vmem:[%s1117_s29] sm:$0x3] %vm1111_vm0, %v429_v42 }
  0xb2   : > { %842 = shalt.err (!%p839_p3)
}
  0xb3   : > { %s843_s23 = scalar_lea.hbm %s1221_s11, 32  ;;  %s847_s30 = scalar_lea.hbm %s1275_s2, 64 }
  0xb4   : > { %p844_p6 = scmp.ne.s32.totalorder %s1221_s11, %s843_s23  ;;  %p848_p8 = scmp.lt.u32.totalorder %s1221_s11, %s1275_s2 }
  0xb5   : > { %p849_p7 = scmp.lt.u32.totalorder %s847_s30, %s843_s23  ;;  %p851_p10 = scmp.lt.u32.totalorder %s843_s23, %s1221_s11 }
  0xb6   : > { %p845_p13 = pnand %p844_p6, %p1295_p0 }
  0xb7   : > { %p850_p4 = por %p849_p7, %p848_p8 }
  0xb8   : > { %p846_p5 = pneg %p845_p13 }
  0xb9   : > { %p852_p12 = por %p851_p10, %p850_p4 }
  0xbb   : > { %p853_p1 = pnand %p852_p12, %p846_p5 }
  0xbd   : > { %856 = shalt.err (!%p853_p1)
}
  0xbe   : > { %662 = dma.vmem_to_hbm [thread:$0]  (%p1295_p0), %s1223_s4, 32, %s1221_s11, %s457_s19  }
  0xbf PF: > { %s502_s22 = sand.u32 1, %s899_s12   ;;  %p1296_p2 = scmp.ne.s32.totalorder %s1282_s27, 0 }
  0xc0   : > { %p1297_p9 = scmp.ge.s32.totalorder %s919_s17, 2  ;;  %s503_s6 = scalar_lea.sflag [#allocation5], %s502_s22 }
  0xc2   : > { %p674_p11 = pnand %p1297_p9, %p1296_p2 }
  0xc4   : > { %890 = dma.done.wait (!%p674_p11), %s503_s6, 32  }
  0xc5   : > { %892 = vsyncadd (!%p674_p11), %s503_s6, 4294967264  ;;  %s512_s5 = scalar_lea.sflag [#allocation10], %s502_s22 }
  0xc6   : > { %894 = dma.done.wait (!%p674_p11), %s512_s5, 32  }
  0xc7   : > { %896 = vsyncadd (!%p674_p11), %s512_s5, 4294967264  ;;  %s26_s17 = sadd.s32 1, %s919_s17   ;;  %s1298_s12 = smov %s903_s13 }
  0xc8   : > { %p23_p3 = scmp.ge.s32.totalorder %s26_s17, 4   ;;  %s1299_s13 = smov %s907_s14 }
  0xc9   : > { %s1300_s14 = smov %s1005_s26  ;;  %s1301_s15 = smov %s915_s16 }
  0xca   : > { %s1302_s16 = smov %s1304_s20  ;;  %25 = sbr.rel (!%p23_p3) target bundleno = 10 (0xa), region = 107 }
  0xd1   :  { %517 = vsyncpa [#allocation4], 1 }
  0xd2   :  { %519 = vsyncpa [#allocation4 + $0x1], 1 }
  0xd3   :  { %520 = vsyncpa [#allocation7], 1 }
  0xd4   :  { %522 = vsyncpa [#allocation7 + $0x1], 1 }
  0xd5   :  { %523 = vsyncpa [#allocation5], 1 }
  0xd6   :  { %525 = vsyncpa [#allocation5 + $0x1], 1 }
  0xd7   :  { %526 = vsyncpa [#allocation10], 1 }
  0xd8   :  { %528 = vsyncpa [#allocation10 + $0x1], 1 }

</bundles_post_ra>
